<compile_context>
chip_gen: v5e
topology: v5e:2x2
jax: 0.10.0
libtpu: 0.0.40
codegen_flags: <defaults>
</compile_context>

<pallas_src>
import jax
import jax.numpy as jnp
from jax.experimental import pallas as pl
from jax.experimental.pallas import tpu as pltpu


def _scell_kernel(hx_ref, gb_ref, c0_ref, c1_ref, c2_ref, cg_ref, w_ref,
                  nh_ref, nc_ref):
    H = nh_ref.shape[-1]

    hx = hx_ref[0]                                   # (tT, 3H+IN)  bf16
    # Single fused MXU matmul (bf16 x bf16, f32 accumulation).
    gates = jnp.dot(hx, w_ref[...], preferred_element_type=jnp.float32)
    gates = gates + gb_ref[0]                        # + (V(g) + b), (1,7H) broadcast over rows

    o_g = gates[:, 5 * H:6 * H]                      # o gate is used raw (no activation)
    u_g = jnp.tanh(gates[:, 6 * H:7 * H])

    # softmax(sigmoid(.)) across the 5 gates {i,l,r,f,s}: sigmoid/exp applied once
    # to the contiguous (tT, 5H) slab, then sliced per gate.
    e = jnp.exp(jax.nn.sigmoid(gates[:, :5 * H]))
    ei = e[:, 0 * H:1 * H]
    el = e[:, 1 * H:2 * H]
    er = e[:, 2 * H:3 * H]
    ef = e[:, 3 * H:4 * H]
    es = e[:, 4 * H:5 * H]
    inv = pl.reciprocal(ei + el + er + ef + es, approx=True)   # EUP vrcp

    c0 = c0_ref[0]
    c1 = c1_ref[0]
    c2 = c2_ref[0]
    cg = cg_ref[0]                                   # (1, H) broadcasts over rows

    # new_c = c0*l + c1*f + r*c2 + s*c_g + i*u, with the common 1/denom factored out.
    new_c = (c0 * el + c1 * ef + er * c2 + es * cg + ei * u_g) * inv
    new_h = o_g * jnp.tanh(new_c)

    nh_ref[0] = new_h.astype(nh_ref.dtype)
    nc_ref[0] = new_c.astype(nc_ref.dtype)


def _pick_row_tile(T):
    """Largest multiple-of-8 divisor of T that is <= 512 (or T itself)."""
    if T <= 512 or T % 8 != 0:
        return T
    for cand in range(512, 7, -8):
        if T % cand == 0:
            return cand
    return T


def scell_pallas(x, h, c, g, c_g, W, U, V, Vb):
    """W: (7H,3H), U: (7H,IN), V: (7H,H), Vb: (7H,) -- PyTorch nn.Linear convention."""
    B, T, IN = x.shape
    H = V.shape[1]
    K = 3 * H + IN

    # Hoist V(g) + bias out of the kernel: one (B,H)x(H,7H) matmul for all batches.
    gb = (g.astype(jnp.float32) @ V.T.astype(jnp.float32)
          + Vb.astype(jnp.float32)).reshape(B, 1, 7 * H)

    # Fuse W and U; cast MXU operands to bf16 (halves weight + activation DMA bytes).
    Wf = jnp.concatenate([W.T, U.T], axis=0).astype(jnp.bfloat16)      # (3H+IN, 7H)
    hx = jnp.concatenate([h, x], axis=-1).astype(jnp.bfloat16)         # (B, T, 3H+IN)

    # Contiguous per-batch cell-state planes instead of a strided (3,B,T,H) block.
    c0, c1, c2 = c[0], c[1], c[2]
    cg3 = c_g.astype(jnp.float32).reshape(B, 1, H)

    tT = _pick_row_tile(T)
    grid = (B, T // tT)

    in_specs = [
        pl.BlockSpec((1, tT, K), lambda b, t: (b, t, 0)),          # [h, x] rows (bf16)
        pl.BlockSpec((1, 1, 7 * H), lambda b, t: (b, 0, 0)),       # V(g)+b      (f32)
        pl.BlockSpec((1, tT, H), lambda b, t: (b, t, 0)),          # c[0]
        pl.BlockSpec((1, tT, H), lambda b, t: (b, t, 0)),          # c[1]
        pl.BlockSpec((1, tT, H), lambda b, t: (b, t, 0)),          # c[2]
        pl.BlockSpec((1, 1, H), lambda b, t: (b, 0, 0)),           # c_g
        pl.BlockSpec((K, 7 * H), lambda b, t: (0, 0)),             # fused weight (bf16)
    ]
    out_specs = (
        pl.BlockSpec((1, tT, H), lambda b, t: (b, t, 0)),
        pl.BlockSpec((1, tT, H), lambda b, t: (b, t, 0)),
    )
    out_shape = (jax.ShapeDtypeStruct((B, T, H), jnp.float32),
                 jax.ShapeDtypeStruct((B, T, H), jnp.float32))

    return pl.pallas_call(
        _scell_kernel,
        out_shape=out_shape,
        grid=grid,
        in_specs=in_specs,
        out_specs=out_specs,
        compiler_params=pltpu.CompilerParams(
            dimension_semantics=("parallel", "parallel"),
            vmem_limit_bytes=64 * 1024 * 1024),
    )(hx, gb, c0, c1, c2, cg3, Wf)


def scell_ref(x, h, c, g, c_g, W, U, V, Vb):
    """Plain-JAX f32 reference matching the PyTorch semantics."""
    gates = h @ W.T + x @ U.T + (g @ V.T + Vb)[:, None, :]            # (B,T,7H)
    i, l, r, f, s, o, u = jnp.split(gates, 7, axis=-1)
    u = jnp.tanh(u)
    stk = jnp.stack([i, l, r, f, s], axis=-2)                         # (B,T,5,H)
    soft = jax.nn.softmax(jax.nn.sigmoid(stk), axis=-2)
    i, l, r, f, s = [soft[..., k, :] for k in range(5)]
    new_c = c[0] * l + c[1] * f + r * c[2] + s * c_g[:, None, :] + i * u
    new_h = o * jnp.tanh(new_c)
    return new_h, new_c


if __name__ == "__main__":
    B, T, IN, H = 2, 8, 16, 32

    key = jax.random.PRNGKey(0)
    ks = jax.random.split(key, 9)

    x = jax.random.normal(ks[0], (B, T, IN), jnp.float32)
    h = jax.random.normal(ks[1], (B, T, 3 * H), jnp.float32)
    c = jax.random.normal(ks[2], (3, B, T, H), jnp.float32)
    g = jax.random.normal(ks[3], (B, H), jnp.float32)
    c_g = jax.random.normal(ks[4], (B, H), jnp.float32)

    # deterministic parameter init (nn.Linear-style uniform)
    def lin_init(k, out_f, in_f):
        bound = 1.0 / jnp.sqrt(in_f)
        return jax.random.uniform(k, (out_f, in_f), jnp.float32, -bound, bound)

    W = lin_init(ks[5], 7 * H, 3 * H)       # self.W (no bias)
    U = lin_init(ks[6], 7 * H, IN)          # self.U (no bias)
    V = lin_init(ks[7], 7 * H, H)           # self.V (with bias)
    Vb = jax.random.uniform(ks[8], (7 * H,), jnp.float32,
                            -1.0 / jnp.sqrt(H), 1.0 / jnp.sqrt(H))

    nh, nc = scell_pallas(x, h, c, g, c_g, W, U, V, Vb)
    jax.block_until_ready((nh, nc))

    nh_ref, nc_ref = scell_ref(x, h, c, g, c_g, W, U, V, Vb)
    # bf16 MXU operands + approx reciprocal -> loosened tolerance vs f32 reference.
    assert jnp.allclose(nh, nh_ref, atol=5e-2, rtol=5e-2)
    assert jnp.allclose(nc, nc_ref, atol=5e-2, rtol=5e-2)

    print("KERNEL_OK")
</pallas_src>

<mosaic_0001>
module attributes {stable_mosaic.version = 11 : i64} {
  func.func @_scell_kernel(%arg0: i32, %arg1: i32, %arg2: memref<1x8x112xbf16, #tpu.memory_space<vmem>>, %arg3: memref<1x1x224xf32, #tpu.memory_space<vmem>>, %arg4: memref<1x8x32xf32, #tpu.memory_space<vmem>>, %arg5: memref<1x8x32xf32, #tpu.memory_space<vmem>>, %arg6: memref<1x8x32xf32, #tpu.memory_space<vmem>>, %arg7: memref<1x1x32xf32, #tpu.memory_space<vmem>>, %arg8: memref<112x224xbf16, #tpu.memory_space<vmem>>, %arg9: memref<1x8x32xf32, #tpu.memory_space<vmem>>, %arg10: memref<1x8x32xf32, #tpu.memory_space<vmem>>) attributes {dimension_semantics = [#tpu.dimension_semantics<parallel>, #tpu.dimension_semantics<parallel>], iteration_bounds = array<i64: 2, 1>, scalar_prefetch = 0 : i64, scratch_operands = 0 : i64, tpu.core_type = #tpu.core_type<tc>, window_params = [{transform_indices = @transform_0, window_bounds = array<i64: 1, 8, 112>}, {transform_indices = @transform_1, window_bounds = array<i64: 1, 1, 224>}, {transform_indices = @transform_2, window_bounds = array<i64: 1, 8, 32>}, {transform_indices = @transform_3, window_bounds = array<i64: 1, 8, 32>}, {transform_indices = @transform_4, window_bounds = array<i64: 1, 8, 32>}, {transform_indices = @transform_5, window_bounds = array<i64: 1, 1, 32>}, {pipeline_mode = #tpu.pipeline_mode<synchronous>, transform_indices = @transform_6, window_bounds = array<i64: 112, 224>}, {transform_indices = @transform_7, window_bounds = array<i64: 1, 8, 32>}, {transform_indices = @transform_8, window_bounds = array<i64: 1, 8, 32>}]} {
    %c0 = arith.constant 0 : index
    %c0_0 = arith.constant 0 : index
    %c0_1 = arith.constant 0 : index
    %0 = vector.load %arg2[%c0, %c0_0, %c0_1] : memref<1x8x112xbf16, #tpu.memory_space<vmem>>, vector<1x8x112xbf16>
    %1 = vector.shape_cast %0 : vector<1x8x112xbf16> to vector<8x112xbf16>
    %c0_2 = arith.constant 0 : index
    %c0_3 = arith.constant 0 : index
    %2 = vector.load %arg8[%c0_2, %c0_3] : memref<112x224xbf16, #tpu.memory_space<vmem>>, vector<112x224xbf16>
    %cst = arith.constant dense<0.000000e+00> : vector<8x224xf32>
    %3 = tpu.matmul %1, %2, %cst {dimension_numbers = #tpu.dot_dimension_numbers<[1], [0], [0], [1], [0, 0, 1, 1], [], []>} : vector<8x112xbf16>, vector<112x224xbf16>, vector<8x224xf32> -> vector<8x224xf32>
    %c0_4 = arith.constant 0 : index
    %c0_5 = arith.constant 0 : index
    %c0_6 = arith.constant 0 : index
    %4 = vector.load %arg3[%c0_4, %c0_5, %c0_6] : memref<1x1x224xf32, #tpu.memory_space<vmem>>, vector<1x1x224xf32>
    %5 = vector.shape_cast %4 : vector<1x1x224xf32> to vector<1x224xf32>
    %6 = vector.broadcast %5 : vector<1x224xf32> to vector<8x224xf32>
    %7 = arith.addf %3, %6 : vector<8x224xf32>
    %8 = vector.extract_strided_slice %7 {offsets = [0, 160], sizes = [8, 32], strides = [1, 1]} : vector<8x224xf32> to vector<8x32xf32>
    %9 = vector.extract_strided_slice %7 {offsets = [0, 192], sizes = [8, 32], strides = [1, 1]} : vector<8x224xf32> to vector<8x32xf32>
    %10 = math.tanh %9 : vector<8x32xf32>
    %11 = vector.extract_strided_slice %7 {offsets = [0, 0], sizes = [8, 160], strides = [1, 1]} : vector<8x224xf32> to vector<8x160xf32>
    %12 = arith.negf %11 : vector<8x160xf32>
    %13 = math.exp %12 : vector<8x160xf32>
    %cst_7 = arith.constant 1.000000e+00 : f32
    %14 = vector.broadcast %cst_7 : f32 to vector<8x160xf32>
    %15 = arith.addf %14, %13 : vector<8x160xf32>
    %16 = arith.divf %14, %15 : vector<8x160xf32>
    %17 = math.exp %16 : vector<8x160xf32>
    %18 = vector.extract_strided_slice %17 {offsets = [0, 0], sizes = [8, 32], strides = [1, 1]} : vector<8x160xf32> to vector<8x32xf32>
    %19 = vector.extract_strided_slice %17 {offsets = [0, 32], sizes = [8, 32], strides = [1, 1]} : vector<8x160xf32> to vector<8x32xf32>
    %20 = vector.extract_strided_slice %17 {offsets = [0, 64], sizes = [8, 32], strides = [1, 1]} : vector<8x160xf32> to vector<8x32xf32>
    %21 = vector.extract_strided_slice %17 {offsets = [0, 96], sizes = [8, 32], strides = [1, 1]} : vector<8x160xf32> to vector<8x32xf32>
    %22 = vector.extract_strided_slice %17 {offsets = [0, 128], sizes = [8, 32], strides = [1, 1]} : vector<8x160xf32> to vector<8x32xf32>
    %23 = arith.addf %18, %19 : vector<8x32xf32>
    %24 = arith.addf %23, %20 : vector<8x32xf32>
    %25 = arith.addf %24, %21 : vector<8x32xf32>
    %26 = arith.addf %25, %22 : vector<8x32xf32>
    %27 = tpu.reciprocal %26 {approx = true} : vector<8x32xf32> -> vector<8x32xf32>
    %c0_8 = arith.constant 0 : index
    %c0_9 = arith.constant 0 : index
    %c0_10 = arith.constant 0 : index
    %28 = vector.load %arg4[%c0_8, %c0_9, %c0_10] : memref<1x8x32xf32, #tpu.memory_space<vmem>>, vector<1x8x32xf32>
    %29 = vector.shape_cast %28 : vector<1x8x32xf32> to vector<8x32xf32>
    %c0_11 = arith.constant 0 : index
    %c0_12 = arith.constant 0 : index
    %c0_13 = arith.constant 0 : index
    %30 = vector.load %arg5[%c0_11, %c0_12, %c0_13] : memref<1x8x32xf32, #tpu.memory_space<vmem>>, vector<1x8x32xf32>
    %31 = vector.shape_cast %30 : vector<1x8x32xf32> to vector<8x32xf32>
    %c0_14 = arith.constant 0 : index
    %c0_15 = arith.constant 0 : index
    %c0_16 = arith.constant 0 : index
    %32 = vector.load %arg6[%c0_14, %c0_15, %c0_16] : memref<1x8x32xf32, #tpu.memory_space<vmem>>, vector<1x8x32xf32>
    %33 = vector.shape_cast %32 : vector<1x8x32xf32> to vector<8x32xf32>
    %c0_17 = arith.constant 0 : index
    %c0_18 = arith.constant 0 : index
    %c0_19 = arith.constant 0 : index
    %34 = vector.load %arg7[%c0_17, %c0_18, %c0_19] : memref<1x1x32xf32, #tpu.memory_space<vmem>>, vector<1x1x32xf32>
    %35 = vector.shape_cast %34 : vector<1x1x32xf32> to vector<1x32xf32>
    %36 = arith.mulf %29, %19 : vector<8x32xf32>
    %37 = arith.mulf %31, %21 : vector<8x32xf32>
    %38 = arith.addf %36, %37 : vector<8x32xf32>
    %39 = arith.mulf %20, %33 : vector<8x32xf32>
    %40 = arith.addf %38, %39 : vector<8x32xf32>
    %41 = vector.broadcast %35 : vector<1x32xf32> to vector<8x32xf32>
    %42 = arith.mulf %22, %41 : vector<8x32xf32>
    %43 = arith.addf %40, %42 : vector<8x32xf32>
    %44 = arith.mulf %18, %10 : vector<8x32xf32>
    %45 = arith.addf %43, %44 : vector<8x32xf32>
    %46 = arith.mulf %45, %27 : vector<8x32xf32>
    %47 = math.tanh %46 : vector<8x32xf32>
    %48 = arith.mulf %8, %47 : vector<8x32xf32>
    %c0_20 = arith.constant 0 : index
    %c0_21 = arith.constant 0 : index
    %c0_22 = arith.constant 0 : index
    %49 = vector.load %arg9[%c0_20, %c0_21, %c0_22] : memref<1x8x32xf32, #tpu.memory_space<vmem>>, vector<1x8x32xf32>
    %50 = vector.shape_cast %49 : vector<1x8x32xf32> to vector<8x32xf32>
    %51 = vector.shape_cast %48 : vector<8x32xf32> to vector<1x8x32xf32>
    tpu.vector_store %arg9[%c0_20, %c0_21, %c0_22], %51 {strides = array<i32>} : memref<1x8x32xf32, #tpu.memory_space<vmem>>, vector<1x8x32xf32>,
    %c0_23 = arith.constant 0 : index
    %c0_24 = arith.constant 0 : index
    %c0_25 = arith.constant 0 : index
    %52 = vector.load %arg10[%c0_23, %c0_24, %c0_25] : memref<1x8x32xf32, #tpu.memory_space<vmem>>, vector<1x8x32xf32>
    %53 = vector.shape_cast %52 : vector<1x8x32xf32> to vector<8x32xf32>
    %54 = vector.shape_cast %46 : vector<8x32xf32> to vector<1x8x32xf32>
    tpu.vector_store %arg10[%c0_23, %c0_24, %c0_25], %54 {strides = array<i32>} : memref<1x8x32xf32, #tpu.memory_space<vmem>>, vector<1x8x32xf32>,
    return
  }
  func.func @transform_0(%arg0: i32, %arg1: i32) -> (i32, i32, i32) {
    %c0_i32 = arith.constant 0 : i32
    %c0_i32_0 = arith.constant 0 : i32
    return %arg0, %arg1, %c0_i32 : i32, i32, i32
  }
  func.func @transform_1(%arg0: i32, %arg1: i32) -> (i32, i32, i32) {
    %c0_i32 = arith.constant 0 : i32
    %c0_i32_0 = arith.constant 0 : i32
    %c0_i32_1 = arith.constant 0 : i32
    return %arg0, %c0_i32, %c0_i32_0 : i32, i32, i32
  }
  func.func @transform_2(%arg0: i32, %arg1: i32) -> (i32, i32, i32) {
    %c0_i32 = arith.constant 0 : i32
    %c0_i32_0 = arith.constant 0 : i32
    return %arg0, %arg1, %c0_i32 : i32, i32, i32
  }
  func.func @transform_3(%arg0: i32, %arg1: i32) -> (i32, i32, i32) {
    %c0_i32 = arith.constant 0 : i32
    %c0_i32_0 = arith.constant 0 : i32
    return %arg0, %arg1, %c0_i32 : i32, i32, i32
  }
  func.func @transform_4(%arg0: i32, %arg1: i32) -> (i32, i32, i32) {
    %c0_i32 = arith.constant 0 : i32
    %c0_i32_0 = arith.constant 0 : i32
    return %arg0, %arg1, %c0_i32 : i32, i32, i32
  }
  func.func @transform_5(%arg0: i32, %arg1: i32) -> (i32, i32, i32) {
    %c0_i32 = arith.constant 0 : i32
    %c0_i32_0 = arith.constant 0 : i32
    %c0_i32_1 = arith.constant 0 : i32
    return %arg0, %c0_i32, %c0_i32_0 : i32, i32, i32
  }
  func.func @transform_6(%arg0: i32, %arg1: i32) -> (i32, i32) {
    %c0_i32 = arith.constant 0 : i32
    %c0_i32_0 = arith.constant 0 : i32
    %c0_i32_1 = arith.constant 0 : i32
    return %c0_i32, %c0_i32_0 : i32, i32
  }
  func.func @transform_7(%arg0: i32, %arg1: i32) -> (i32, i32, i32) {
    %c0_i32 = arith.constant 0 : i32
    %c0_i32_0 = arith.constant 0 : i32
    return %arg0, %arg1, %c0_i32 : i32, i32, i32
  }
  func.func @transform_8(%arg0: i32, %arg1: i32) -> (i32, i32, i32) {
    %c0_i32 = arith.constant 0 : i32
    %c0_i32_0 = arith.constant 0 : i32
    return %arg0, %arg1, %c0_i32 : i32, i32, i32
  }
}

</mosaic_0001>

<bundles_post_ra>
// kernel: tpu_custom_call.1
= control target key start
LH: loop header
LB: loop body
LE: loop exit
PB: predicated region body
PF: predicated region fallthrough
CT: control target
= control target key end

     0   :  { %s1875_s0 = inlined_call_operand.hbm [shape: bf16[2,8,112], index: 0, kind: input, shape index: {}]   ;;  %s1876_s1 = inlined_call_operand.hbm [shape: f32[2,1,224], index: 1, kind: input, shape index: {}]   ;;  %s1877_s2 = inlined_call_operand.hbm [shape: f32[2,8,32], index: 2, kind: input, shape index: {}]   ;;  %s1878_s3 = inlined_call_operand.hbm [shape: f32[2,8,32], index: 3, kind: input, shape index: {}]   ;;  %s1879_s4 = inlined_call_operand.hbm [shape: f32[2,8,32], index: 4, kind: input, shape index: {}]   ;;  %s1880_s5 = inlined_call_operand.vmem [shape: f32[2,1,32], index: 5, kind: input, shape index: {}]   ;;  %s1881_s6 = inlined_call_operand.hbm [shape: bf16[112,224], index: 6, kind: input, shape index: {}]   ;;  %s1882_s7 = inlined_call_operand.hbm [shape: f32[2,8,32], index: 7, kind: output, shape index: {0}]   ;;  %s1883_s8 = inlined_call_operand.hbm [shape: f32[2,8,32], index: 8, kind: output, shape index: {1}]  }
   0x1   :  { %1893 = sst [smem:[#allocation29_spill]] %s1875_s0 }
   0x2   :  { %1894 = sst [smem:[#allocation30_spill]] %s1876_s1 }
   0x3   :  { %1895 = sst [smem:[#allocation31_spill]] %s1878_s3 }
   0x4   :  { %1896 = sst [smem:[#allocation32_spill]] %s1881_s6 }
   0x5   :  { %1897 = sst [smem:[#allocation33_spill]] %s1882_s7 }
   0x6   :  { %1898 = sst [smem:[#allocation34_spill]] %s1883_s8 }
   0x7   :  { %14 = vsyncpa [#allocation3], 0 }
   0x8   :  { %16 = vsyncpa [#allocation3 + $0x1], 0 }
   0x9   :  { %17 = vsyncpa [#allocation6], 0 }
   0xa   :  { %19 = vsyncpa [#allocation6 + $0x1], 0 }
   0xb   :  { %20 = vsyncpa [#allocation9], 0 }
   0xc   :  { %22 = vsyncpa [#allocation9 + $0x1], 0 }
   0xd   :  { %23 = vsyncpa [#allocation12], 0 }
   0xe   :  { %24 = vsyncpa [#allocation4], 0 }
   0xf   :  { %26 = vsyncpa [#allocation4 + $0x1], 0 }
  0x10   :  { %27 = vsyncpa [#allocation15], 0 }
  0x11   :  { %29 = vsyncpa [#allocation15 + $0x1], 0  ;;  %s1609_s27 = smov 0   ;;  %s1611_s28 = smov 0  }
  0x12   :  { %s1613_s29 = smov 0   ;;  %s1615_s30 = smov 0  }
  0x13   :  { %s1617_s9 = smov 0   ;;  %s1619_s10 = smov 0  }
  0x14 LB: > { %1899 = sst [smem:[#allocation22_spill]] %s1536_s27  ;;  %s47_s11 = sadd.s32 1, %s1552_s9  ;;  %s1556_s10 = sphi %s1619_s10, %s35_s10   ;;  %s1552_s9 = sphi %s1617_s9, %s1923_s9   ;;  %s1548_s30 = sphi %s1615_s30, %s1922_s30   ;;  %s1544_s29 = sphi %s1613_s29, %s1921_s29   ;;  %s1540_s28 = sphi %s1611_s28, %s1925_s28   ;;  %s1536_s27 = sphi %s1609_s27, %s1924_s27  }
  0x15   : > { %1900 = sst [smem:[#allocation23_spill]] %s1544_s29  ;;  %s56_s12 = sadd.s32 1, %s1544_s29 }
  0x16   : > { %1901 = sst [smem:[#allocation24_spill]] %s1552_s9  ;;  %p49_p0 = scmp.ge.s32.totalorder %s47_s11, 2 }
  0x17   : > { %1902 = sst [smem:[#allocation25_spill]] %s1556_s10  ;;  %p63_p1 = scmp.ne.s32.totalorder %s1544_s29, %s1540_s28 }
  0x18   : > { %p64_p2 = scmp.eq.s32.totalorder %s1556_s10, 0  ;;  %p1028_p3 = scmp.ge.s32.totalorder %s1556_s10, 2 }
  0x19   : > { %s1927_s11 = smov (%p49_p0, %s47_s11), 0  ;;  %p1174_p5 = scmp.lt.s32.totalorder %s1556_s10, 2 }
  0x1a   : > { %1903 = sst [smem:[#allocation26_spill]] %s1927_s11  ;;  %p65_p4 = por %p64_p2, %p63_p1 }
  0x1b   : > { %s51_s13 = ssub.s32 %s1552_s9, %s1927_s11  ;;  %s1654_s14 = sand.u32 1, %s1544_s29  }
  0x1c   : > { %p54_p6 = scmp.eq.s32.totalorder %s51_s13, 0  ;;  %p1656_p7 = pnand %p1174_p5, %p65_p4 }
  0x1d   : > { %s340_s16 = sand.u32 1, %s1556_s10   ;;  %s1031_s17 = sshll.u32 %s1654_s14, 1 }
  0x1e   : > { %s1663_s18 = scalar_select %p54_p6, %s1544_s29, %s56_s12  }
  0x1f   : > { %s1032_s19 = sshll.u32 %s1552_s9, 1  ;;  %s1906_s1 = sld [smem:[#allocation30_spill]] }
  0x20   : > { %1905 = sst [smem:[#allocation27_spill]] %s1663_s18  ;;  %s344_s23 = scalar_lea.vmem [#allocation5], %s1031_s17 }
  0x21   : > { %s352_s24 = sshll.u32 %s344_s23, 4  ;;  %s1670_s26 = sshll.u32 %s1654_s14, 3  ;;  %s353_s24 = int_to_ptr.vmem [resolvable:$true] %s352_s24 }
  0x22   : > { %s1672_s12 = scalar_lea.sflag [#allocation6], %s340_s16  ;;  %s1678_s13 = sshll.u32 %s1552_s9, 3 }
  0x23   : > { %s1907_s3 = sld [smem:[#allocation31_spill]]  ;;  %p69_p8 = scmp.ne.s32.totalorder %s1540_s28, %s1536_s27 }
  0x24   : > { %p1026_p13 = scmp.ge.s32.totalorder %s1556_s10, 1  ;;  %p293_p4 = scmp.lt.s32.totalorder %s1556_s10, 3 }
  0x25   : > { %s348_s22 = scalar_lea.hbm %s1906_s1, %s1032_s19  ;;  %s1685_s1 = scalar_lea.sflag [#allocation9], %s340_s16 }
  0x26   : > { %s350_s25 = sshll.u32 %s348_s22, 4  ;;  %s383_s22 = scalar_lea.vmem [#allocation8], %s1670_s26  ;;  %s351_s25 = int_to_ptr.hbm [resolvable:$true] %s350_s25 }
  0x27   : > { %1156 = dma.hbm_to_vmem [thread:$0]  (!%p1656_p7), %s351_s25, 32, %s353_s24, %s1672_s12  }
  0x28   : > { %s392_s23 = sshll.u32 %s383_s22, 4  ;;  %s1691_s24 = sadd.s32 4294967295, %s1556_s10   ;;  %s393_s23 = int_to_ptr.vmem [resolvable:$true] %s392_s23 }
  0x29   : > { %s388_s20 = scalar_lea.hbm %s1907_s3, %s1678_s13  ;;  %s1025_s25 = sadd.s32 4294967294, %s1556_s10  }
  0x2a   : > { %s390_s21 = sshll.u32 %s388_s20, 4  ;;  %p70_p9 = scmp.eq.s32.totalorder %s1691_s24, 0  ;;  %s391_s21 = int_to_ptr.hbm [resolvable:$true] %s390_s21 }
  0x2b   : > { %1162 = dma.hbm_to_vmem [thread:$0]  (!%p1656_p7), %s391_s21, 128, %s393_s23, %s1685_s1  }
  0x2c   : > { %p252_p10 = scmp.eq.s32.totalorder %s1691_s24, 1  ;;  %p258_p11 = scmp.eq.s32.totalorder %s1025_s25, 1 }
  0x2d   : > { %p1700_p12 = por %p70_p9, %p69_p8  ;;  %s1912_s6 = sld [smem:[#allocation32_spill]] }
  0x2e   : > { %p1708_p0 = por %p252_p10, %p63_p1  ;;  %p1712_p2 = por %p258_p11, %p69_p8 }
  0x2f   : > { %p1720_p5 = pnand %p1026_p13, %p293_p4  ;;  %s1558_s25 = smov [#allocation11]  }
  0x30   : > { %s1910_s19 = scalar_select %p1712_p2, 1, 0 }
  0x31   : > { %s306_s3 = sshll.u32 %s1558_s25, 4  ;;  %p1146_p1 = pneg %p1720_p5  ;;  %s307_s3 = int_to_ptr.vmem [resolvable:$true] %s306_s3 }
  0x32   : > { %1911 = sst [smem:[#allocation28_spill]] %s1910_s19  ;;  %s1029_s11 = sshll.u32 %s1654_s14, 2 }
  0x33   : > { %s304_s22 = sshll.u32 %s1912_s6, 4  ;;  %p1147_p6 = pnand %p1146_p1, %p70_p9  ;;  %s305_s22 = int_to_ptr.hbm [resolvable:$true] %s304_s22 }
  0x34   : > { %s1030_s20 = sshll.u32 %s1552_s9, 2  ;;  %s1914_s0 = sld [smem:[#allocation29_spill]] }
  0x35   : > { %s1559_s29 = smov 128   ;;  %s1560_s10 = smov 8  }
  0x36   : > { %1149 = dma.hbm_to_vmem [thread:$0]  (!%p1147_p6), %s305_s22, 1792, %s307_s3, [#allocation12], %s1559_s29, %s1559_s29, %s1560_s10  }
  0x37   : > { %s324_s19 = scalar_lea.vmem [#allocation2], %s1029_s11  ;;  %s321_s7 = scalar_lea.sflag [#allocation3], %s1654_s14 }
  0x38   : > { %s333_s27 = sshll.u32 %s324_s19, 4  ;;  %s408_s10 = scalar_lea.hbm %s1879_s4, %s1678_s13  ;;  %s334_s27 = int_to_ptr.vmem [resolvable:$true] %s333_s27 }
  0x39   : > { %s410_s11 = sshll.u32 %s408_s10, 4  ;;  %s411_s11 = int_to_ptr.hbm [resolvable:$true] %s410_s11 }
  0x3a   : > { %s329_s18 = scalar_lea.hbm %s1914_s0, %s1030_s20  ;;  %s368_s20 = scalar_lea.hbm %s1877_s2, %s1678_s13 }
  0x3b   : > { %s331_s25 = sshll.u32 %s329_s18, 4  ;;  %s370_s21 = sshll.u32 %s368_s20, 4  ;;  %s332_s25 = int_to_ptr.hbm [resolvable:$true] %s331_s25  ;;  %s371_s21 = int_to_ptr.hbm [resolvable:$true] %s370_s21 }
  0x3c   : > { %1153 = dma.hbm_to_vmem [thread:$0]  (!%p1656_p7), %s332_s25, 64, %s334_s27, %s321_s7  }
  0x3d   : > { %s363_s0 = scalar_lea.vmem [#allocation7], %s1670_s26  ;;  %s403_s18 = scalar_lea.vmem [#allocation10], %s1670_s26 }
  0x3e   : > { %s372_s8 = sshll.u32 %s363_s0, 4  ;;  %s412_s14 = sshll.u32 %s403_s18, 4  ;;  %s373_s8 = int_to_ptr.vmem [resolvable:$true] %s372_s8  ;;  %s413_s14 = int_to_ptr.vmem [resolvable:$true] %s412_s14 }
  0x3f   : > { %1159 = dma.hbm_to_vmem [thread:$0]  (!%p1656_p7), %s371_s21, 128, %s373_s8, %s1672_s12  }
  0x40   : > { %1165 = dma.hbm_to_vmem [thread:$0]  (!%p1656_p7), %s411_s11, 128, %s413_s14, %s1685_s1  }
  0x41   : > { %427 = sbr.rel (%p1720_p5) target bundleno = 652 (0x28c), region = 48  ;;  %s1755_s0 = sand.u32 (!%p1720_p5), 1, %s1540_s28  }
  0x42   : > { %s1040_s7 = sshll.u32 (!%p1720_p5), %s1755_s0, 2  ;;  %s430_s8 = scalar_lea.sflag (!%p1720_p5), [#allocation3], %s1755_s0 }
  0x43   : > { %s1759_s27 = scalar_lea.vmem (!%p1720_p5), [#allocation2], %s1040_s7 }
  0x46   : > { %1511 = dma.done.wait (%p1700_p12), %s430_s8, 64  }
  0x47   : > { %1513 = vsyncadd (%p1700_p12), %s430_s8, 4294967232  ;;  %s439_s1 = sand.u32 1, %s1691_s24   ;;  %s1041_s9 = sshll.u32 %s1755_s0, 1 }
  0x48   : > { %s440_s15 = scalar_lea.sflag [#allocation6], %s439_s1  ;;  %s1767_s26 = scalar_lea.vmem [#allocation5], %s1041_s9 }
  0x49   : > { %1515 = dma.done.wait (%p1700_p12), %s440_s15, 160  }
  0x4a   : > { %1517 = vsyncadd (%p1700_p12), %s440_s15, 4294967136  ;;  %s1774_s12 = sshll.u32 %s1755_s0, 3  ;;  %s460_s19 = scalar_lea.sflag [#allocation9], %s439_s1 }
  0x4b   : > { %s453_s13 = scalar_lea.vmem [#allocation7], %s1774_s12  ;;  %s463_s22 = scalar_lea.vmem [#allocation8], %s1774_s12 }
  0x4c   : > { %1519 = dma.done.wait (%p1700_p12), %s460_s19, 256  }
  0x4d   : > { %1521 = vsyncadd (%p1700_p12), %s460_s19, 4294967040  ;;  %s473_s23 = scalar_lea.vmem [#allocation10], %s1774_s12 }
  0x4e   : > { %1523 = dma.done.wait (%p70_p9), [#allocation12], 1792  }
  0x4f   : > { %1525 = vsyncadd (%p70_p9), [#allocation12], 4294965504  ;;  %v1098_v0 = vld [vmem:[#allocation11 + $0x60] sm:$0xf]  ;;  %v1127_v1 = vld [vmem:[#allocation11 + $0x64] sm:$0xf0] }
  0x50   : > { %v1090_v2 = vld [vmem:[#allocation11 + $0x50] sm:$0xf]  ;;  %v1099_v3 = vor.u32 %v1127_v1, %v1098_v0  ;;  %v1125_v4 = vld [vmem:[#allocation11 + $0x54] sm:$0xf0]  ;;  %v1082_v6 = vld [vmem:[#allocation11 + $0x40] sm:$0xf] }
  0x51   : > { %v1091_v5 = vor.u32 %v1125_v4, %v1090_v2  ;;  %v1123_v7 = vld [vmem:[#allocation11 + $0x44] sm:$0xf0]  ;;  %v1126_v8 = vld [vmem:[#allocation11 + $0x64] sm:$0xf]  ;;  %v1100_v9 = vld [vmem:[#allocation11 + $0x68] sm:$0xf0] }
  0x52   : > { %640 = vmatpush.bf16.msra.mxu0 %v1099_v3  ;;  %v1124_v10 = vld [vmem:[#allocation11 + $0x54] sm:$0xf]  ;;  %v1103_v11 = vor.u32 %v1126_v8, %v1100_v9  ;;  %v1092_v12 = vld [vmem:[#allocation11 + $0x58] sm:$0xf0]  ;;  %v1083_v13 = vor.u32 %v1123_v7, %v1082_v6  ;;  %v1074_v14 = vld [vmem:[#allocation11 + $0x30] sm:$0xf] }
  0x53   : > { %v1121_v15 = vld [vmem:[#allocation11 + $0x34] sm:$0xf0]  ;;  %v1095_v16 = vor.u32 %v1124_v10, %v1092_v12  ;;  %v1122_v17 = vld [vmem:[#allocation11 + $0x44] sm:$0xf]  ;;  %v1084_v18 = vld [vmem:[#allocation11 + $0x48] sm:$0xf0] }
  0x54   : > { %653 = vmatpush.bf16.msra.mxu1 %v1103_v11  ;;  %v725_v19 = vld [vmem:[%s473_s23] sm:$0xff]  ;;  %s1561_s24 = smov 64   ;;  %v1075_v20 = vor.u32 %v1121_v15, %v1074_v14  ;;  %v1066_v21 = vld [vmem:[#allocation11 + $0x20] sm:$0xf]  ;;  %v1119_v22 = vld [vmem:[#allocation11 + $0x24] sm:$0xf0]  ;;  %v1087_v23 = vor.u32 %v1122_v17, %v1084_v18 }
  0x55   : > { %731 = vrot.lane.b32.xlu0 %v725_v19, %s1561_s24  ;;  %v1120_v24 = vld [vmem:[#allocation11 + $0x34] sm:$0xf]  ;;  %v1076_v25 = vld [vmem:[#allocation11 + $0x38] sm:$0xf0]  ;;  %v1067_v26 = vor.u32 %v1119_v22, %v1066_v21  ;;  %v1058_v27 = vld [vmem:[#allocation11 + $0x10] sm:$0xf] }
  0x56   : > { %641 = vmatpush.bf16.msra.mxu0 %v1091_v5  ;;  %v1117_v28 = vld [vmem:[#allocation11 + $0x14] sm:$0xf0]  ;;  %v1079_v29 = vor.u32 %v1120_v24, %v1076_v25  ;;  %v1118_v30 = vld [vmem:[#allocation11 + $0x24] sm:$0xf]  ;;  %v1068_v31 = vld [vmem:[#allocation11 + $0x28] sm:$0xf0] }
  0x57   : > { %v1059_v32 = vor.u32 %v1117_v28, %v1058_v27  ;;  %v1050_v33 = vld [vmem:[#allocation11] sm:$0xf]  ;;  %v1115_v34 = vld [vmem:[#allocation11 + $0x4] sm:$0xf0]  ;;  %v1071_v35 = vor.u32 %v1118_v30, %v1068_v31  ;;  %v1116_v36 = vld [vmem:[#allocation11 + $0x14] sm:$0xf] }
  0x58   : > { %654 = vmatpush.bf16.msra.mxu1 %v1095_v16  ;;  %v1060_v37 = vld [vmem:[#allocation11 + $0x18] sm:$0xf0]  ;;  %v1051_v38 = vor.u32 %v1115_v34, %v1050_v33  ;;  %v1114_v40 = vld [vmem:[#allocation11 + $0x4] sm:$0xf]  ;;  %v1052_v41 = vld [vmem:[#allocation11 + $0x8] sm:$0xf0] }
  0x59   : > { %v1063_v39 = vor.u32 %v1116_v36, %v1060_v37  ;;  %v544_v42 = vld [vmem:[%s1759_s27] sm:$0xf]  ;;  %vm635_vm0 = vcmask 916480   ;;  %v1055_v43 = vor.u32 %v1114_v40, %v1052_v41  ;;  %p540_p7 = scmp.lt.s32.totalorder %s1548_s30, 1  ;;  %v559_v44 = vld [vmem:[%s1767_s26] sm:$0x3] }
  0x5a   : > { %642 = vmatpush.bf16.msra.mxu0 %v1083_v13  ;;  %v561_v45 = vperm.slane %v559_v44, 0  ;;  %v562_v1 = vperm.slane %v559_v44, 1  ;;  %s1562_s21 = smov 96   ;;  %s1563_s3 = smov 32   ;;  %v723_v25 = vld [vmem:[%s453_s13] sm:$0xff]  ;;  %vm762_vm9 = vcmask 261120  }
  0x5b   : > { %s1791_s16 = scalar_select %p540_p7, %s1548_s30, 1 }
  0x5c   : > { %655 = vmatpush.bf16.msra.mxu1 %v1087_v23  ;;  %s539_s11 = scalar_lea.vmem [#allocation14], %s1774_s12  ;;  %s1110_s18 = sshll.u32 %s1548_s30, 3 }
  0x5d   : > { %s542_s20 = scalar_lea.vmem %s1880_s5, %s1791_s16  ;;  %s1915_s8 = sld [smem:[#allocation34_spill]] }
  0x5e   : > { %643 = vmatpush.bf16.msra.mxu0 %v1075_v20  ;;  %v1231_v30 = vld [vmem:[%s542_s20] ss:$0 sm:$0xff]  ;;  %s799_s1 = sshll.u32 %s539_s11, 4  ;;  %s771_s15 = scalar_lea.sflag [#allocation15], %s1755_s0  ;;  %s800_s1 = int_to_ptr.vmem [resolvable:$true] %s799_s1 }
  0x60   : > { %656 = vmatpush.bf16.msra.mxu1 %v1079_v29 }
  0x62   : > { %644 = vmatpush.bf16.msra.mxu0 %v1067_v26  ;;  %v724_v26 = vld [vmem:[%s463_s22] sm:$0xff] }
  0x63   : > { %s797_s27 = scalar_lea.hbm %s1915_s8, %s1110_s18  ;;  %s1450_s30 = scalar_lea.hbm %s1915_s8, 16 }
  0x64   : > { %657 = vmatpush.bf16.msra.mxu1 %v1071_v35  ;;  %s801_s9 = sshll.u32 %s797_s27, 4  ;;  %s802_s9 = int_to_ptr.hbm [resolvable:$true] %s801_s9 }
  0x65   : > { %s1444_s26 = sshra.s32 %s802_s9, 4  ;;  %s1445_s26 = int_to_ptr.hbm [resolvable:$true] %s1444_s26 }
  0x66   : > { %645 = vmatpush.bf16.msra.mxu0 %v1059_v32  ;;  %s1446_s13 = scalar_lea.hbm %s1445_s26, 8  ;;  %p1451_p11 = scmp.lt.s32.totalorder %s1445_s26, %s1915_s8 }
  0x67   : > { %p1447_p8 = scmp.ne.s32.totalorder %s1445_s26, %s1446_s13  ;;  %p1452_p12 = scmp.lt.s32.totalorder %s1450_s30, %s1446_s13 }
  0x68   : > { %658 = vmatpush.bf16.msra.mxu1 %v1063_v39 }
  0x69   : > { %p1448_p9 = pnand %p1447_p8, %p1708_p0  ;;  %p1453_p13 = por %p1452_p12, %p1451_p11 }
  0x6a   : > { %646 = vmatpush.bf16.msra.mxu0 %v1051_v38 }
  0x6b   : > { %p1449_p10 = pneg %p1448_p9 }
  0x6c   : > { %659 = vmatpush.bf16.msra.mxu1 %v1055_v43 }
  0x6d   : > { %1104 = vmatmul.msk.bf16.vlgmr.msra.gmra.mxu0 %vm635_vm0, %v544_v42  ;;  %p1454_p4 = pnand %p1453_p13, %p1449_p10 }
  0x6f   : > { %1105 = vmatmul.msk.bf16.vlgmr.msra.gmra.mxu1 %vm635_vm0, %v544_v42 }
  0xc7   : > { %v732_v2 = vpop.permute.xlu0 %731 }
  0xea   : > { %v648_v46 = vpop.f32.mrf.mxu0 }
  0xeb   : > { %v649_v47 = vadd.f32 %v648_v46, %v561_v45 }
  0xec   : > { %v661_v50 = vpop.f32.mrf.mxu1 }
  0xed   : > { %v1106_v48 = vmul.f32 -1.442695, %v649_v47  ;;  %v1798_v3 = vadd.f32 %v661_v50, %v562_v1 }
  0xef   : > { %1232 = vpow2.f32 %v1106_v48  ;;  %v1107_v7 = vmul.f32 -1.442695, %v1798_v3 }
  0xf2   : > { %v650_v49 = vpop.f32.mrf.mxu0 }
  0xf4   : > { %v663_v53 = vpop.f32.mrf.mxu1 }
  0xf5   : > { %v1233_v51 = vpop.eup %1232 }
  0xf6   : > { %v672_v52 = vadd.f32 1.0, %v1233_v51 }
  0xf8   : > { %1234 = vrcp.f32 %v672_v52  ;;  %v685_v57 = vand.u32 2147483648, %v672_v52  ;;  %v683_v59 = vand.u32 2147483647, %v672_v52  ;;  %vm679_vm2 = vweird.f32 %v672_v52 }
  0xfa   : > { %v686_v61 = vor.u32 1.1754944e-38, %v685_v57  ;;  %vm684_vm4 = vcmp.eq.f32.partialorder %v683_v59, 8.507059e+37 }
  0xfe   : > { %v1235_v54 = vpop.eup %1234 }
  0xff   : > { %v675_v55 = vmul.f32 %v1235_v54, %v672_v52  ;;  %vm680_vm1 = vweird.f32 %v1235_v54 }
 0x100   : > { %vm681_vm3 = vmor %vm679_vm2, %vm680_vm1 }
 0x101   : > { %v676_v56 = vsub.f32 1.0, %v675_v55 }
 0x103   : > { %v677_v58 = vmul.f32 %v1235_v54, %v676_v56 }
 0x105   : > { %v678_v60 = vadd.f32 %v1235_v54, %v677_v58 }
 0x107   : > { %v682_v62 = vsel %vm681_vm3, %v1235_v54, %v678_v60 }
 0x108   : > { %v687_v63 = vsel %vm684_vm4, %v686_v61, %v682_v62 }
 0x109   : > { %v704_v0 = vmul.f32 1.442695, %v687_v63 }
 0x10b   : > { %1236 = vpow2.f32 %v704_v0 }
 0x10c   : > { %1238 = vtanh.f32 %v1798_v3 }
 0x10d   : > { %1240 = vpow2.f32 %v1107_v7 }
 0x111   : > { %v1237_v4 = vpop.eup %1236 }
 0x112   : > { %v734_v5 = vmul.f32 %v1237_v4, %v732_v2  ;;  %713 = vrot.lane.b32.xlu1 %v1237_v4, %s1561_s24  ;;  %709 = vrot.lane.b32.xlu0 %v1237_v4, %s1562_s21  ;;  %v1239_v6 = vpop.eup %1238 }
 0x113   : > { %v1241_v8 = vpop.eup %1240 }
 0x114   : > { %736 = vrot.lane.b32.xlu2 %v734_v5, %s1561_s24  ;;  %v673_v9 = vadd.f32 1.0, %v1241_v8 }
 0x116   : > { %1242 = vrcp.f32 %v673_v9  ;;  %vm694_vm5 = vweird.f32 %v673_v9  ;;  %v700_v14 = vand.u32 2147483648, %v673_v9  ;;  %v698_v16 = vand.u32 2147483647, %v673_v9 }
 0x118   : > { %v701_v17 = vor.u32 1.1754944e-38, %v700_v14  ;;  %vm699_vm8 = vcmp.eq.f32.partialorder %v698_v16, 8.507059e+37 }
 0x11a   : > { %717 = vrot.lane.b32.xlu1 %v1237_v4, %s1563_s3 }
 0x11c   : > { %746 = vrot.lane.b32.xlu2 %v1239_v6, %s1561_s24  ;;  %v1243_v10 = vpop.eup %1242 }
 0x11d   : > { %v690_v11 = vmul.f32 %v1243_v10, %v673_v9  ;;  %vm695_vm6 = vweird.f32 %v1243_v10 }
 0x11e   : > { %vm696_vm7 = vmor %vm694_vm5, %vm695_vm6 }
 0x11f   : > { %v691_v12 = vsub.f32 1.0, %v690_v11 }
 0x121   : > { %v692_v13 = vmul.f32 %v1243_v10, %v691_v12 }
 0x123   : > { %v693_v15 = vadd.f32 %v1243_v10, %v692_v13 }
 0x125   : > { %v697_v18 = vsel %vm696_vm7, %v1243_v10, %v693_v15 }
 0x126   : > { %v702_v19 = vsel %vm699_vm8, %v701_v17, %v697_v18 }
 0x127   : > { %v706_v22 = vmul.f32 1.442695, %v702_v19 }
 0x129   : > { %1244 = vpow2.f32 %v706_v22 }
 0x12f   : > { %v1245_v33 = vpop.eup %1244 }
 0x130   : > { %v743_v37 = vmul.f32 %v1245_v33, %v1231_v30 }
 0x16e   : > { %v737_v23 = vpop.permute.xlu2 %736 }
 0x176   : > { %v747_v36 = vpop.permute.xlu2 %746 }
 0x177   : > { %v749_v39 = vmul.f32 %v1237_v4, %v747_v36 }
 0x184   : > { %v714_v20 = vpop.permute.xlu1 %713  ;;  %v710_v21 = vpop.permute.xlu0 %709 }
 0x185   : > { %v712_v24 = vadd.f32 %v1237_v4, %v710_v21  ;;  %v727_v29 = vmul.f32 %v723_v25, %v710_v21 }
 0x187   : > { %v716_v27 = vadd.f32 %v714_v20, %v712_v24 }
 0x18c   : > { %v718_v28 = vpop.permute.xlu1 %717 }
 0x18d   : > { %v720_v31 = vadd.f32 %v718_v28, %v716_v27  ;;  %v728_v32 = vmul.f32 %v724_v26, %v718_v28 }
 0x18f   : > { %v721_v34 = vadd.f32 %v1245_v33, %v720_v31  ;;  %v729_v35 = vadd.f32 %v728_v32, %v727_v29 }
 0x191   : > { %1246 = vrcp.f32 %v721_v34  ;;  %v739_v38 = vadd.f32 %v737_v23, %v729_v35 }
 0x193   : > { %v744_v40 = vadd.f32 %v743_v37, %v739_v38 }
 0x195   : > { %v750_v41 = vadd.f32 %v749_v39, %v744_v40 }
 0x197   : > { %v1247_v42 = vpop.eup %1246 }
 0x198   : > { %v751_v43 = vmul.f32 %v1247_v42, %v750_v41 }
 0x19a   : > { %1248 = vtanh.f32 %v751_v43  ;;  %764 = vst.msk [vmem:[%s539_s11] sm:$0xff] %vm762_vm9, %v751_v43 }
 0x1a0   : > { %v1249_v44 = vpop.eup %1248 }
 0x1a1   : > { %754 = vrot.lane.b32.xlu0 %v1249_v44, %s1563_s3 }
 0x1a2   : > { %1457 = shalt.err (!%p1454_p4)
}
 0x1a3   : > { %1143 = dma.vmem_to_hbm [thread:$0]  (%p1708_p0), %s800_s1, 128, %s802_s9, %s771_s15  }
 0x1a4   : > { %s1916_s6 = sld [smem:[#allocation33_spill]]  ;;  %s532_s3 = scalar_lea.vmem [#allocation13], %s1774_s12 }
 0x1a5   : > { %s784_s29 = sshll.u32 %s532_s3, 4  ;;  %s766_s11 = scalar_lea.sflag [#allocation4], %s1755_s0  ;;  %s785_s29 = int_to_ptr.vmem [resolvable:$true] %s784_s29 }
 0x1aa   : > { %s782_s20 = scalar_lea.hbm %s1916_s6, %s1110_s18  ;;  %s1478_s18 = scalar_lea.hbm %s1916_s6, 16 }
 0x1ab   : > { %s786_s10 = sshll.u32 %s782_s20, 4  ;;  %s787_s10 = int_to_ptr.hbm [resolvable:$true] %s786_s10 }
 0x1ac   : > { %s1472_s14 = sshra.s32 %s787_s10, 4  ;;  %s1473_s14 = int_to_ptr.hbm [resolvable:$true] %s1472_s14 }
 0x1ad   : > { %s1474_s7 = scalar_lea.hbm %s1473_s14, 8  ;;  %p1479_p7 = scmp.lt.s32.totalorder %s1473_s14, %s1916_s6 }
 0x1ae   : > { %p1475_p5 = scmp.ne.s32.totalorder %s1473_s14, %s1474_s7  ;;  %p1480_p8 = scmp.lt.s32.totalorder %s1478_s18, %s1474_s7 }
 0x1b0   : > { %p1476_p1 = pnand %p1475_p5, %p1708_p0  ;;  %p1481_p9 = por %p1480_p8, %p1479_p7 }
 0x1b2   : > { %p1477_p6 = pneg %p1476_p1 }
 0x1b4   : > { %p1482_p10 = pnand %p1481_p9, %p1477_p6 }
 0x213   : > { %v755_v45 = vpop.permute.xlu0 %754 }
 0x214   : > { %v757_v46 = vmul.f32 %v755_v45, %v1798_v3 }
 0x216   : > { %759 = vrot.lane.b32.xlu1 %v757_v46, %s1562_s21 }
 0x288   : > { %v760_v47 = vpop.permute.xlu1 %759 }
 0x289   : > { %763 = vst.msk [vmem:[%s532_s3] sm:$0xff] %vm762_vm9, %v760_v47 }
 0x28a   : > { %1485 = shalt.err (!%p1482_p10)
}
 0x28b   : > { %1142 = dma.vmem_to_hbm [thread:$0]  (%p1708_p0), %s785_s29, 128, %s787_s10, %s766_s11  }
 0x28c PF: > { %s1917_s0 = sld [smem:[#allocation22_spill]]  ;;  %p1167_p11 = pnand %p1028_p3, %p1712_p2 }
 0x28d   : > { %s1919_s15 = sld [smem:[#allocation25_spill]] }
 0x28e   : > { %p1168_p12 = pneg %p1167_p11 }
 0x292   : > { %s813_s26 = sand.u32 1, %s1917_s0  }
 0x293   : > { %s814_s13 = scalar_lea.sflag [#allocation4], %s813_s26 }
 0x294   : > { %1527 = dma.done.wait (%p1168_p12), %s814_s13, 128  }
 0x295   : > { %1529 = vsyncadd (%p1168_p12), %s814_s13, 4294967168  ;;  %s824_s19 = scalar_lea.sflag [#allocation15], %s813_s26 }
 0x296   : > { %1531 = dma.done.wait (%p1168_p12), %s824_s19, 128  }
 0x297   : > { %1533 = vsyncadd (%p1168_p12), %s824_s19, 4294967168  ;;  %s35_s10 = sadd.s32 1, %s1919_s15   ;;  %s1920_s17 = sld [smem:[#allocation23_spill]] }
 0x298   : > { %p32_p13 = scmp.ge.s32.totalorder %s35_s10, 4   ;;  %s1921_s29 = sld [smem:[#allocation27_spill]] }
 0x299   : > { %s1922_s30 = sld [smem:[#allocation24_spill]]  ;;  %s1924_s27 = smov %s1540_s28 }
 0x29a   : > { %s1923_s9 = sld [smem:[#allocation26_spill]]  ;;  %34 = sbr.rel (!%p32_p13) target bundleno = 20 (0x14), region = 165 }
 0x29d   : > { %s1925_s28 = smov %s1920_s17 }
 0x29f   :  { %830 = vsyncpa [#allocation3], 1 }
 0x2a0   :  { %832 = vsyncpa [#allocation3 + $0x1], 1 }
 0x2a1   :  { %833 = vsyncpa [#allocation6], 1 }
 0x2a2   :  { %835 = vsyncpa [#allocation6 + $0x1], 1 }
 0x2a3   :  { %836 = vsyncpa [#allocation9], 1 }
 0x2a4   :  { %838 = vsyncpa [#allocation9 + $0x1], 1 }
 0x2a5   :  { %839 = vsyncpa [#allocation12], 1 }
 0x2a6   :  { %840 = vsyncpa [#allocation4], 1 }
 0x2a7   :  { %842 = vsyncpa [#allocation4 + $0x1], 1 }
 0x2a8   :  { %843 = vsyncpa [#allocation15], 1 }
 0x2a9   :  { %845 = vsyncpa [#allocation15 + $0x1], 1 }

</bundles_post_ra>
